<compile_context>
chip_gen: v6e
topology: v6e:2x2x1
jax: 0.10.0
libtpu: 0.0.40
codegen_flags: <defaults>
</compile_context>

<pallas_src>
import jax
import jax.numpy as jnp
import numpy as np
from jax.experimental import pallas as pl
from jax.experimental.pallas import tpu as pltpu

HIDDEN = 32      # hidden_size
OUTPUT = 64      # output_size (vocab)
V_PAD = 128      # vocab padded to a full 128-lane vreg for lane-dense stores
N_LAYERS = 2     # n_layers
BATCH = 2
SEQ = 8          # encoder max length


def _fused_decoder_kernel(emb_ref, h0_ref, enc_ref, enc_t_ref, mask_ref,
                          gru_w_ref, gru_b_ref, wc_ref, bc_ref, wo_ref, bo_ref,
                          out_ref, hid_ref):
    """Single invocation runs ALL T decode steps (fori_loop over time)."""
    H = HIDDEN
    T = emb_ref.shape[0]
    f32 = jnp.float32
    bf16 = jnp.bfloat16

    # ---- loop-invariant loads (everything stays VMEM-resident) ----
    enc = enc_ref[...]                                  # (B*S, H)  bf16
    enc_t = enc_t_ref[...]                              # (H, B*S)  bf16
    attn_mask = mask_ref[...]                           # (B, B*S)  f32 additive
    wih = [gru_w_ref[l, 0] for l in range(N_LAYERS)]    # (H, 3H)   bf16
    whh = [gru_w_ref[l, 1] for l in range(N_LAYERS)]    # (H, 3H)   bf16
    bih = [gru_b_ref[l, 0] for l in range(N_LAYERS)]    # (1, 3H)   f32
    bhh = [gru_b_ref[l, 1] for l in range(N_LAYERS)]    # (1, 3H)   f32
    wc = wc_ref[...]                                    # (2H, H)   bf16
    bc = bc_ref[...]                                    # (1, H)    f32
    wo = wo_ref[...]                                    # (H, 128)  bf16
    bo = bo_ref[...]                                    # (1, 128)  f32

    def step(t, hs):
        # ---- multi-layer GRU cell, gate-packed (PyTorch order r, z, n) ----
        x_bf = emb_ref[t]                               # (B, H) bf16
        new_hs = []
        for l in range(N_LAYERS):
            h = hs[l]                                   # (B, H) f32 carry
            gi = jnp.dot(x_bf, wih[l], preferred_element_type=f32) + bih[l]
            gh = jnp.dot(h.astype(bf16), whh[l], preferred_element_type=f32) + bhh[l]
            r = jax.nn.sigmoid(gi[:, :H] + gh[:, :H])
            z = jax.nn.sigmoid(gi[:, H:2 * H] + gh[:, H:2 * H])
            n = jnp.tanh(gi[:, 2 * H:] + r * gh[:, 2 * H:])
            h_new = (1.0 - z) * n + z * h               # f32 state update
            new_hs.append(h_new)
            x_bf = h_new.astype(bf16)                   # feeds next layer
        rnn_out = new_hs[-1]                            # (B, H) f32
        rnn_bf = x_bf                                   # (B, H) bf16

        # ---- Luong 'dot' attention on the MXU over flattened (B*S) keys ----
        scores = jnp.dot(rnn_bf, enc_t, preferred_element_type=f32) + attn_mask
        m = jnp.max(scores, axis=1, keepdims=True)      # (B, 1)
        e = jnp.exp(scores - m)
        attn_w = e / jnp.sum(e, axis=1, keepdims=True)  # exact divide (f32)
        context = jnp.dot(attn_w.astype(bf16), enc, preferred_element_type=f32)

        # ---- concat -> tanh(Linear) -> output Linear (vocab padded to 128) ----
        concat_in = jnp.concatenate([rnn_out, context], axis=1).astype(bf16)
        concat_out = jnp.tanh(
            jnp.dot(concat_in, wc, preferred_element_type=f32) + bc)
        out_ref[t] = jnp.dot(concat_out.astype(bf16), wo,
                             preferred_element_type=f32) + bo   # (B, 128)
        return tuple(new_hs)

    hs0 = tuple(h0_ref[l] for l in range(N_LAYERS))
    hs_final = jax.lax.fori_loop(0, T, step, hs0, unroll=True)
    for l in range(N_LAYERS):                           # single final store
        hid_ref[l] = hs_final[l]


def prepare_params(p):
    """One-time weight re-layout + bf16 cast, hoisted out of the decode path.

    * GRU weights packed lane-major per layer: Wih.T / Whh.T -> (H, 3H) each
      (gates r,z,n concatenated along output lanes), stacked to (L, 2, H, 3H).
    * GRU biases kept f32: (L, 2, 1, 3H).
    * concat head Wc.T (2H, H) bf16, bias (1, H) f32.
    * output head Wo.T padded 64 -> 128 lanes (H, 128) bf16, bias (1, 128) f32.
    """
    H, L, V = HIDDEN, N_LAYERS, OUTPUT
    wih_pack = jnp.transpose(p["wih"], (0, 2, 1))                     # (L, H, 3H)
    whh_pack = jnp.transpose(p["whh"], (0, 2, 1))                     # (L, H, 3H)
    gru_w = jnp.stack([wih_pack, whh_pack], axis=1).astype(jnp.bfloat16)
    gru_b = jnp.stack([p["bih"], p["bhh"]], axis=1)[:, :, None, :]    # (L,2,1,3H) f32

    wc = p["wc"].T.astype(jnp.bfloat16)                               # (2H, H)
    bc = p["bc"][None, :]                                             # (1, H) f32
    wo = jnp.pad(p["wo"].T, ((0, 0), (0, V_PAD - V))).astype(jnp.bfloat16)  # (H,128)
    bo = jnp.pad(p["bo"], (0, V_PAD - V))[None, :]                    # (1, 128) f32
    emb = p["embedding"].astype(jnp.bfloat16)

    return {"embedding": emb, "gru_w": gru_w, "gru_b": gru_b,
            "wc": wc, "bc": bc, "wo": wo, "bo": bo}


def luong_decoder_decode(tokens, last_hidden, encoder_outputs, prep):
    """Run T decode steps in ONE pallas_call (single grid step, in-kernel loop).

    tokens          : (T, B) int32 token ids for every step (teacher forcing)
    last_hidden     : (L, B, H) f32 initial GRU state
    encoder_outputs : (S, B, H) f32, seq-major (PyTorch layout)
    Returns (logits (T, B, V), final hidden (L, B, H)).
    """
    T = tokens.shape[0]
    B, S, H, L = BATCH, SEQ, HIDDEN, N_LAYERS

    # Embedding gather for all steps at once (single XLA gather, glue code).
    emb_all = jnp.take(prep["embedding"], tokens.reshape(-1), axis=0)
    emb_all = emb_all.reshape(T, B, H)                                # bf16

    # Batch-major flatten: row b*S+s holds encoder_outputs[s, b, :].
    enc_flat = jnp.transpose(encoder_outputs, (1, 0, 2)).reshape(B * S, H)
    enc_flat = enc_flat.astype(jnp.bfloat16)                          # (B*S, H)
    enc_flat_t = jnp.transpose(enc_flat)                              # (H, B*S)

    # Additive attention mask: batch row b may only attend to keys [b*S,(b+1)*S).
    mask = np.full((B, B * S), -1e30, np.float32)
    for b in range(B):
        mask[b, b * S:(b + 1) * S] = 0.0
    attn_mask = jnp.asarray(mask)

    grid_spec = pltpu.PrefetchScalarGridSpec(
        num_scalar_prefetch=0,
        grid=(1,),                                        # single kernel step
        in_specs=[
            pl.BlockSpec((T, B, H), lambda i: (0, 0, 0)),             # embeddings
            pl.BlockSpec((L, B, H), lambda i: (0, 0, 0)),             # h0
            pl.BlockSpec((B * S, H), lambda i: (0, 0)),               # enc flat
            pl.BlockSpec((H, B * S), lambda i: (0, 0)),               # enc flat^T
            pl.BlockSpec((B, B * S), lambda i: (0, 0)),               # attn mask
            pl.BlockSpec((L, 2, H, 3 * H), lambda i: (0, 0, 0, 0)),   # GRU weights
            pl.BlockSpec((L, 2, 1, 3 * H), lambda i: (0, 0, 0, 0)),   # GRU biases
            pl.BlockSpec((2 * H, H), lambda i: (0, 0)),               # concat W
            pl.BlockSpec((1, H), lambda i: (0, 0)),                   # concat b
            pl.BlockSpec((H, V_PAD), lambda i: (0, 0)),               # out W
            pl.BlockSpec((1, V_PAD), lambda i: (0, 0)),               # out b
        ],
        out_specs=(
            pl.BlockSpec((T, B, V_PAD), lambda i: (0, 0, 0)),         # all logits
            pl.BlockSpec((L, B, H), lambda i: (0, 0, 0)),             # final hidden
        ),
    )

    logits_pad, hidden = pl.pallas_call(
        _fused_decoder_kernel,
        grid_spec=grid_spec,
        out_shape=(
            jax.ShapeDtypeStruct((T, B, V_PAD), jnp.float32),
            jax.ShapeDtypeStruct((L, B, H), jnp.float32),
        ),
        compiler_params=pltpu.CompilerParams(
            dimension_semantics=("arbitrary",)),
    )(emb_all, last_hidden, enc_flat, enc_flat_t, attn_mask,
      prep["gru_w"], prep["gru_b"], prep["wc"], prep["bc"],
      prep["wo"], prep["bo"])

    return logits_pad[:, :, :OUTPUT], hidden


def luong_decoder_forward(input_step, last_hidden, encoder_outputs, prep):
    """Single decode step == LuongAttnDecoderRNN.forward (T = 1)."""
    logits, hidden = luong_decoder_decode(input_step, last_hidden,
                                          encoder_outputs, prep)
    return logits[0], hidden


# ---------------- pure-JAX reference (mirrors the PyTorch forward) -------------
def ref_forward(input_step, last_hidden, encoder_outputs, p, op_dtype=jnp.float32):
    """op_dtype=float32 -> exact module semantics.
       op_dtype=bfloat16 -> matmul operands cast to bf16 with f32 accumulation,
       matching the kernel's MXU numerics (elementwise math stays f32)."""
    H = HIDDEN
    c = lambda a: a.astype(op_dtype)
    dot = lambda a, b: jnp.dot(c(a), c(b), preferred_element_type=jnp.float32)

    emb = p["embedding"][input_step[0]]                        # (B, H)
    x = emb
    hids = []
    for l in range(N_LAYERS):
        h = last_hidden[l]
        gi = dot(x, p["wih"][l].T) + p["bih"][l]
        gh = dot(h, p["whh"][l].T) + p["bhh"][l]
        r = jax.nn.sigmoid(gi[:, :H] + gh[:, :H])
        z = jax.nn.sigmoid(gi[:, H:2 * H] + gh[:, H:2 * H])
        n = jnp.tanh(gi[:, 2 * H:] + r * gh[:, 2 * H:])
        h_new = (1.0 - z) * n + z * h
        hids.append(h_new)
        x = h_new
    rnn_out = x
    hidden = jnp.stack(hids, axis=0)

    scores = jnp.einsum("bh,sbh->sb", c(rnn_out), c(encoder_outputs),
                        preferred_element_type=jnp.float32)    # (S, B)
    attn_w = jax.nn.softmax(scores.T, axis=1)                  # (B, S)
    context = jnp.einsum("bs,sbh->bh", c(attn_w), c(encoder_outputs),
                         preferred_element_type=jnp.float32)   # (B, H)
    concat_in = jnp.concatenate([rnn_out, context], axis=1)
    concat_out = jnp.tanh(dot(concat_in, p["wc"].T) + p["bc"])
    out = dot(concat_out, p["wo"].T) + p["bo"]
    return out, hidden


def ref_decode(tokens, last_hidden, encoder_outputs, p, op_dtype=jnp.float32):
    outs, hidden = [], last_hidden
    for t in range(tokens.shape[0]):
        out, hidden = ref_forward(tokens[t:t + 1], hidden, encoder_outputs, p,
                                  op_dtype)
        outs.append(out)
    return jnp.stack(outs, axis=0), hidden


def init_params(key):
    ks = jax.random.split(key, 10)
    s = 0.1
    return {
        "embedding": jax.random.normal(ks[0], (OUTPUT, HIDDEN), jnp.float32) * s,
        "wih": jax.random.normal(ks[1], (N_LAYERS, 3 * HIDDEN, HIDDEN), jnp.float32) * s,
        "whh": jax.random.normal(ks[2], (N_LAYERS, 3 * HIDDEN, HIDDEN), jnp.float32) * s,
        "bih": jax.random.normal(ks[3], (N_LAYERS, 3 * HIDDEN), jnp.float32) * s,
        "bhh": jax.random.normal(ks[4], (N_LAYERS, 3 * HIDDEN), jnp.float32) * s,
        "wc": jax.random.normal(ks[5], (HIDDEN, 2 * HIDDEN), jnp.float32) * s,
        "bc": jax.random.normal(ks[6], (HIDDEN,), jnp.float32) * s,
        "wo": jax.random.normal(ks[7], (OUTPUT, HIDDEN), jnp.float32) * s,
        "bo": jax.random.normal(ks[8], (OUTPUT,), jnp.float32) * s,
    }


if __name__ == "__main__":
    key = jax.random.PRNGKey(0)
    kp, k1, k2, k3 = jax.random.split(key, 4)
    params = init_params(kp)
    prep = prepare_params(params)        # one-time re-layout + bf16 cast (hoisted)

    T = 6
    tokens = jax.random.randint(k1, (T, BATCH), 0, OUTPUT, dtype=jnp.int32)
    last_hidden = jax.random.normal(k2, (N_LAYERS, BATCH, HIDDEN), jnp.float32)
    encoder_outputs = jax.random.normal(k3, (SEQ, BATCH, HIDDEN), jnp.float32)

    # Tolerances:
    #  * MATCH_TOL: kernel vs a bf16-operand-matched JAX reference (identical
    #    matmul numerics) -- tight structural/correctness check.
    #  * F32_TOL: kernel vs the exact-f32 module reference -- envelope for bf16
    #    operand rounding compounded over a 6-step, 2-layer GRU recurrence
    #    (per-review bf16 MXU-operand change).
    MATCH_TOL = 5e-3
    F32_TOL = 1.5e-1

    # --- single decode step (== LuongAttnDecoderRNN.forward) ---
    out1, hid1 = luong_decoder_forward(tokens[:1], last_hidden, encoder_outputs, prep)
    out1 = jax.block_until_ready(out1)
    hid1 = jax.block_until_ready(hid1)
    for op_dtype, tol in ((jnp.bfloat16, MATCH_TOL), (jnp.float32, F32_TOL)):
        r_out, r_hid = ref_forward(tokens[:1], last_hidden, encoder_outputs,
                                   params, op_dtype)
        np.testing.assert_allclose(np.asarray(hid1), np.asarray(r_hid),
                                   rtol=tol, atol=tol)
        np.testing.assert_allclose(np.asarray(out1), np.asarray(r_out),
                                   rtol=tol, atol=tol)

    # --- full T-step decode, fused into ONE pallas_call / ONE grid step ---
    outs, hid = luong_decoder_decode(tokens, last_hidden, encoder_outputs, prep)
    outs = jax.block_until_ready(outs)
    hid = jax.block_until_ready(hid)
    for op_dtype, tol in ((jnp.bfloat16, MATCH_TOL), (jnp.float32, F32_TOL)):
        r_outs, r_hid = ref_decode(tokens, last_hidden, encoder_outputs,
                                   params, op_dtype)
        np.testing.assert_allclose(np.asarray(hid), np.asarray(r_hid),
                                   rtol=tol, atol=tol)
        np.testing.assert_allclose(np.asarray(outs), np.asarray(r_outs),
                                   rtol=tol, atol=tol)

    print("KERNEL_OK")
</pallas_src>

<mosaic_0001>
module attributes {stable_mosaic.version = 11 : i64} {
  func.func @_fused_decoder_kernel(%arg0: i32, %arg1: memref<1x2x32xbf16, #tpu.memory_space<vmem>>, %arg2: memref<2x2x32xf32, #tpu.memory_space<vmem>>, %arg3: memref<16x32xbf16, #tpu.memory_space<vmem>>, %arg4: memref<32x16xbf16, #tpu.memory_space<vmem>>, %arg5: memref<2x16xf32, #tpu.memory_space<vmem>>, %arg6: memref<2x2x32x96xbf16, #tpu.memory_space<vmem>>, %arg7: memref<2x2x1x96xf32, #tpu.memory_space<vmem>>, %arg8: memref<64x32xbf16, #tpu.memory_space<vmem>>, %arg9: memref<1x32xf32, #tpu.memory_space<vmem>>, %arg10: memref<32x128xbf16, #tpu.memory_space<vmem>>, %arg11: memref<1x128xf32, #tpu.memory_space<vmem>>, %arg12: memref<1x2x128xf32, #tpu.memory_space<vmem>>, %arg13: memref<2x2x32xf32, #tpu.memory_space<vmem>>) attributes {dimension_semantics = [#tpu.dimension_semantics<arbitrary>], iteration_bounds = array<i64: 1>, scalar_prefetch = 0 : i64, scratch_operands = 0 : i64, tpu.core_type = #tpu.core_type<tc>, window_params = [{pipeline_mode = #tpu.pipeline_mode<synchronous>, transform_indices = @transform_0, window_bounds = array<i64: 1, 2, 32>}, {pipeline_mode = #tpu.pipeline_mode<synchronous>, transform_indices = @transform_1, window_bounds = array<i64: 2, 2, 32>}, {pipeline_mode = #tpu.pipeline_mode<synchronous>, transform_indices = @transform_2, window_bounds = array<i64: 16, 32>}, {pipeline_mode = #tpu.pipeline_mode<synchronous>, transform_indices = @transform_3, window_bounds = array<i64: 32, 16>}, {pipeline_mode = #tpu.pipeline_mode<synchronous>, transform_indices = @transform_4, window_bounds = array<i64: 2, 16>}, {pipeline_mode = #tpu.pipeline_mode<synchronous>, transform_indices = @transform_5, window_bounds = array<i64: 2, 2, 32, 96>}, {pipeline_mode = #tpu.pipeline_mode<synchronous>, transform_indices = @transform_6, window_bounds = array<i64: 2, 2, 1, 96>}, {pipeline_mode = #tpu.pipeline_mode<synchronous>, transform_indices = @transform_7, window_bounds = array<i64: 64, 32>}, {pipeline_mode = #tpu.pipeline_mode<synchronous>, transform_indices = @transform_8, window_bounds = array<i64: 1, 32>}, {pipeline_mode = #tpu.pipeline_mode<synchronous>, transform_indices = @transform_9, window_bounds = array<i64: 32, 128>}, {pipeline_mode = #tpu.pipeline_mode<synchronous>, transform_indices = @transform_10, window_bounds = array<i64: 1, 128>}, {pipeline_mode = #tpu.pipeline_mode<synchronous>, transform_indices = @transform_11, window_bounds = array<i64: 1, 2, 128>}, {pipeline_mode = #tpu.pipeline_mode<synchronous>, transform_indices = @transform_12, window_bounds = array<i64: 2, 2, 32>}]} {
    %c0 = arith.constant 0 : index
    %c0_0 = arith.constant 0 : index
    %0 = vector.load %arg3[%c0, %c0_0] : memref<16x32xbf16, #tpu.memory_space<vmem>>, vector<16x32xbf16>
    %c0_1 = arith.constant 0 : index
    %c0_2 = arith.constant 0 : index
    %1 = vector.load %arg4[%c0_1, %c0_2] : memref<32x16xbf16, #tpu.memory_space<vmem>>, vector<32x16xbf16>
    %c0_3 = arith.constant 0 : index
    %c0_4 = arith.constant 0 : index
    %2 = vector.load %arg5[%c0_3, %c0_4] : memref<2x16xf32, #tpu.memory_space<vmem>>, vector<2x16xf32>
    %c0_5 = arith.constant 0 : index
    %c0_6 = arith.constant 0 : index
    %c0_7 = arith.constant 0 : index
    %c0_8 = arith.constant 0 : index
    %3 = vector.load %arg6[%c0_5, %c0_6, %c0_7, %c0_8] : memref<2x2x32x96xbf16, #tpu.memory_space<vmem>>, vector<1x1x32x96xbf16>
    %4 = vector.shape_cast %3 : vector<1x1x32x96xbf16> to vector<32x96xbf16>
    %c1 = arith.constant 1 : index
    %c0_9 = arith.constant 0 : index
    %c0_10 = arith.constant 0 : index
    %c0_11 = arith.constant 0 : index
    %5 = vector.load %arg6[%c1, %c0_9, %c0_10, %c0_11] : memref<2x2x32x96xbf16, #tpu.memory_space<vmem>>, vector<1x1x32x96xbf16>
    %6 = vector.shape_cast %5 : vector<1x1x32x96xbf16> to vector<32x96xbf16>
    %c0_12 = arith.constant 0 : index
    %c1_13 = arith.constant 1 : index
    %c0_14 = arith.constant 0 : index
    %c0_15 = arith.constant 0 : index
    %7 = vector.load %arg6[%c0_12, %c1_13, %c0_14, %c0_15] : memref<2x2x32x96xbf16, #tpu.memory_space<vmem>>, vector<1x1x32x96xbf16>
    %8 = vector.shape_cast %7 : vector<1x1x32x96xbf16> to vector<32x96xbf16>
    %c1_16 = arith.constant 1 : index
    %c1_17 = arith.constant 1 : index
    %c0_18 = arith.constant 0 : index
    %c0_19 = arith.constant 0 : index
    %9 = vector.load %arg6[%c1_16, %c1_17, %c0_18, %c0_19] : memref<2x2x32x96xbf16, #tpu.memory_space<vmem>>, vector<1x1x32x96xbf16>
    %10 = vector.shape_cast %9 : vector<1x1x32x96xbf16> to vector<32x96xbf16>
    %c0_20 = arith.constant 0 : index
    %c0_21 = arith.constant 0 : index
    %c0_22 = arith.constant 0 : index
    %c0_23 = arith.constant 0 : index
    %11 = vector.load %arg7[%c0_20, %c0_21, %c0_22, %c0_23] : memref<2x2x1x96xf32, #tpu.memory_space<vmem>>, vector<1x1x1x96xf32>
    %12 = vector.shape_cast %11 : vector<1x1x1x96xf32> to vector<1x96xf32>
    %c1_24 = arith.constant 1 : index
    %c0_25 = arith.constant 0 : index
    %c0_26 = arith.constant 0 : index
    %c0_27 = arith.constant 0 : index
    %13 = vector.load %arg7[%c1_24, %c0_25, %c0_26, %c0_27] : memref<2x2x1x96xf32, #tpu.memory_space<vmem>>, vector<1x1x1x96xf32>
    %14 = vector.shape_cast %13 : vector<1x1x1x96xf32> to vector<1x96xf32>
    %c0_28 = arith.constant 0 : index
    %c1_29 = arith.constant 1 : index
    %c0_30 = arith.constant 0 : index
    %c0_31 = arith.constant 0 : index
    %15 = vector.load %arg7[%c0_28, %c1_29, %c0_30, %c0_31] : memref<2x2x1x96xf32, #tpu.memory_space<vmem>>, vector<1x1x1x96xf32>
    %16 = vector.shape_cast %15 : vector<1x1x1x96xf32> to vector<1x96xf32>
    %c1_32 = arith.constant 1 : index
    %c1_33 = arith.constant 1 : index
    %c0_34 = arith.constant 0 : index
    %c0_35 = arith.constant 0 : index
    %17 = vector.load %arg7[%c1_32, %c1_33, %c0_34, %c0_35] : memref<2x2x1x96xf32, #tpu.memory_space<vmem>>, vector<1x1x1x96xf32>
    %18 = vector.shape_cast %17 : vector<1x1x1x96xf32> to vector<1x96xf32>
    %c0_36 = arith.constant 0 : index
    %c0_37 = arith.constant 0 : index
    %19 = vector.load %arg8[%c0_36, %c0_37] : memref<64x32xbf16, #tpu.memory_space<vmem>>, vector<64x32xbf16>
    %c0_38 = arith.constant 0 : index
    %c0_39 = arith.constant 0 : index
    %20 = vector.load %arg9[%c0_38, %c0_39] : memref<1x32xf32, #tpu.memory_space<vmem>>, vector<1x32xf32>
    %c0_40 = arith.constant 0 : index
    %c0_41 = arith.constant 0 : index
    %21 = vector.load %arg10[%c0_40, %c0_41] : memref<32x128xbf16, #tpu.memory_space<vmem>>, vector<32x128xbf16>
    %c0_42 = arith.constant 0 : index
    %c0_43 = arith.constant 0 : index
    %22 = vector.load %arg11[%c0_42, %c0_43] : memref<1x128xf32, #tpu.memory_space<vmem>>, vector<1x128xf32>
    %c0_44 = arith.constant 0 : index
    %c0_45 = arith.constant 0 : index
    %c0_46 = arith.constant 0 : index
    %23 = vector.load %arg2[%c0_44, %c0_45, %c0_46] : memref<2x2x32xf32, #tpu.memory_space<vmem>>, vector<1x2x32xf32>
    %24 = vector.shape_cast %23 : vector<1x2x32xf32> to vector<2x32xf32>
    %c1_47 = arith.constant 1 : index
    %c0_48 = arith.constant 0 : index
    %c0_49 = arith.constant 0 : index
    %25 = vector.load %arg2[%c1_47, %c0_48, %c0_49] : memref<2x2x32xf32, #tpu.memory_space<vmem>>, vector<1x2x32xf32>
    %26 = vector.shape_cast %25 : vector<1x2x32xf32> to vector<2x32xf32>
    %c0_i32 = arith.constant 0 : i32
    %27 = arith.index_cast %c0_i32 : i32 to index
    %c0_50 = arith.constant 0 : index
    %c0_51 = arith.constant 0 : index
    %28 = vector.load %arg1[%27, %c0_50, %c0_51] : memref<1x2x32xbf16, #tpu.memory_space<vmem>>, vector<1x2x32xbf16>
    %29 = vector.shape_cast %28 : vector<1x2x32xbf16> to vector<2x32xbf16>
    %cst = arith.constant dense<0.000000e+00> : vector<2x96xf32>
    %30 = tpu.matmul %29, %4, %cst {dimension_numbers = #tpu.dot_dimension_numbers<[1], [0], [0], [1], [0, 0, 1, 1], [], []>} : vector<2x32xbf16>, vector<32x96xbf16>, vector<2x96xf32> -> vector<2x96xf32>
    %31 = vector.broadcast %12 : vector<1x96xf32> to vector<2x96xf32>
    %32 = arith.addf %30, %31 : vector<2x96xf32>
    %33 = arith.truncf %24 : vector<2x32xf32> to vector<2x32xbf16>
    %cst_52 = arith.constant dense<0.000000e+00> : vector<2x96xf32>
    %34 = tpu.matmul %33, %8, %cst_52 {dimension_numbers = #tpu.dot_dimension_numbers<[1], [0], [0], [1], [0, 0, 1, 1], [], []>} : vector<2x32xbf16>, vector<32x96xbf16>, vector<2x96xf32> -> vector<2x96xf32>
    %35 = vector.broadcast %16 : vector<1x96xf32> to vector<2x96xf32>
    %36 = arith.addf %34, %35 : vector<2x96xf32>
    %37 = vector.extract_strided_slice %32 {offsets = [0, 0], sizes = [2, 32], strides = [1, 1]} : vector<2x96xf32> to vector<2x32xf32>
    %38 = vector.extract_strided_slice %36 {offsets = [0, 0], sizes = [2, 32], strides = [1, 1]} : vector<2x96xf32> to vector<2x32xf32>
    %39 = arith.addf %37, %38 : vector<2x32xf32>
    %40 = arith.negf %39 : vector<2x32xf32>
    %41 = math.exp %40 : vector<2x32xf32>
    %cst_53 = arith.constant 1.000000e+00 : f32
    %42 = vector.broadcast %cst_53 : f32 to vector<2x32xf32>
    %43 = arith.addf %42, %41 : vector<2x32xf32>
    %44 = arith.divf %42, %43 : vector<2x32xf32>
    %45 = vector.extract_strided_slice %32 {offsets = [0, 32], sizes = [2, 32], strides = [1, 1]} : vector<2x96xf32> to vector<2x32xf32>
    %46 = vector.extract_strided_slice %36 {offsets = [0, 32], sizes = [2, 32], strides = [1, 1]} : vector<2x96xf32> to vector<2x32xf32>
    %47 = arith.addf %45, %46 : vector<2x32xf32>
    %48 = arith.negf %47 : vector<2x32xf32>
    %49 = math.exp %48 : vector<2x32xf32>
    %cst_54 = arith.constant 1.000000e+00 : f32
    %50 = vector.broadcast %cst_54 : f32 to vector<2x32xf32>
    %51 = arith.addf %50, %49 : vector<2x32xf32>
    %52 = arith.divf %50, %51 : vector<2x32xf32>
    %53 = vector.extract_strided_slice %32 {offsets = [0, 64], sizes = [2, 32], strides = [1, 1]} : vector<2x96xf32> to vector<2x32xf32>
    %54 = vector.extract_strided_slice %36 {offsets = [0, 64], sizes = [2, 32], strides = [1, 1]} : vector<2x96xf32> to vector<2x32xf32>
    %55 = arith.mulf %44, %54 : vector<2x32xf32>
    %56 = arith.addf %53, %55 : vector<2x32xf32>
    %57 = math.tanh %56 : vector<2x32xf32>
    %cst_55 = arith.constant 1.000000e+00 : f32
    %58 = vector.broadcast %cst_55 : f32 to vector<2x32xf32>
    %59 = arith.subf %58, %52 : vector<2x32xf32>
    %60 = arith.mulf %59, %57 : vector<2x32xf32>
    %61 = arith.mulf %52, %24 : vector<2x32xf32>
    %62 = arith.addf %60, %61 : vector<2x32xf32>
    %63 = arith.truncf %62 : vector<2x32xf32> to vector<2x32xbf16>
    %cst_56 = arith.constant dense<0.000000e+00> : vector<2x96xf32>
    %64 = tpu.matmul %63, %6, %cst_56 {dimension_numbers = #tpu.dot_dimension_numbers<[1], [0], [0], [1], [0, 0, 1, 1], [], []>} : vector<2x32xbf16>, vector<32x96xbf16>, vector<2x96xf32> -> vector<2x96xf32>
    %65 = vector.broadcast %14 : vector<1x96xf32> to vector<2x96xf32>
    %66 = arith.addf %64, %65 : vector<2x96xf32>
    %67 = arith.truncf %26 : vector<2x32xf32> to vector<2x32xbf16>
    %cst_57 = arith.constant dense<0.000000e+00> : vector<2x96xf32>
    %68 = tpu.matmul %67, %10, %cst_57 {dimension_numbers = #tpu.dot_dimension_numbers<[1], [0], [0], [1], [0, 0, 1, 1], [], []>} : vector<2x32xbf16>, vector<32x96xbf16>, vector<2x96xf32> -> vector<2x96xf32>
    %69 = vector.broadcast %18 : vector<1x96xf32> to vector<2x96xf32>
    %70 = arith.addf %68, %69 : vector<2x96xf32>
    %71 = vector.extract_strided_slice %66 {offsets = [0, 0], sizes = [2, 32], strides = [1, 1]} : vector<2x96xf32> to vector<2x32xf32>
    %72 = vector.extract_strided_slice %70 {offsets = [0, 0], sizes = [2, 32], strides = [1, 1]} : vector<2x96xf32> to vector<2x32xf32>
    %73 = arith.addf %71, %72 : vector<2x32xf32>
    %74 = arith.negf %73 : vector<2x32xf32>
    %75 = math.exp %74 : vector<2x32xf32>
    %cst_58 = arith.constant 1.000000e+00 : f32
    %76 = vector.broadcast %cst_58 : f32 to vector<2x32xf32>
    %77 = arith.addf %76, %75 : vector<2x32xf32>
    %78 = arith.divf %76, %77 : vector<2x32xf32>
    %79 = vector.extract_strided_slice %66 {offsets = [0, 32], sizes = [2, 32], strides = [1, 1]} : vector<2x96xf32> to vector<2x32xf32>
    %80 = vector.extract_strided_slice %70 {offsets = [0, 32], sizes = [2, 32], strides = [1, 1]} : vector<2x96xf32> to vector<2x32xf32>
    %81 = arith.addf %79, %80 : vector<2x32xf32>
    %82 = arith.negf %81 : vector<2x32xf32>
    %83 = math.exp %82 : vector<2x32xf32>
    %cst_59 = arith.constant 1.000000e+00 : f32
    %84 = vector.broadcast %cst_59 : f32 to vector<2x32xf32>
    %85 = arith.addf %84, %83 : vector<2x32xf32>
    %86 = arith.divf %84, %85 : vector<2x32xf32>
    %87 = vector.extract_strided_slice %66 {offsets = [0, 64], sizes = [2, 32], strides = [1, 1]} : vector<2x96xf32> to vector<2x32xf32>
    %88 = vector.extract_strided_slice %70 {offsets = [0, 64], sizes = [2, 32], strides = [1, 1]} : vector<2x96xf32> to vector<2x32xf32>
    %89 = arith.mulf %78, %88 : vector<2x32xf32>
    %90 = arith.addf %87, %89 : vector<2x32xf32>
    %91 = math.tanh %90 : vector<2x32xf32>
    %cst_60 = arith.constant 1.000000e+00 : f32
    %92 = vector.broadcast %cst_60 : f32 to vector<2x32xf32>
    %93 = arith.subf %92, %86 : vector<2x32xf32>
    %94 = arith.mulf %93, %91 : vector<2x32xf32>
    %95 = arith.mulf %86, %26 : vector<2x32xf32>
    %96 = arith.addf %94, %95 : vector<2x32xf32>
    %97 = arith.truncf %96 : vector<2x32xf32> to vector<2x32xbf16>
    %cst_61 = arith.constant dense<0.000000e+00> : vector<2x16xf32>
    %98 = tpu.matmul %97, %1, %cst_61 {dimension_numbers = #tpu.dot_dimension_numbers<[1], [0], [0], [1], [0, 0, 1, 1], [], []>} : vector<2x32xbf16>, vector<32x16xbf16>, vector<2x16xf32> -> vector<2x16xf32>
    %99 = arith.addf %98, %2 : vector<2x16xf32>
    %cst_62 = arith.constant dense<0xFF800000> : vector<2xf32>
    %100 = vector.multi_reduction <maximumf>, %99, %cst_62 [1] : vector<2x16xf32> to vector<2xf32>
    %101 = vector.shape_cast %100 : vector<2xf32> to vector<2x1xf32>
    %102 = vector.broadcast %101 : vector<2x1xf32> to vector<2x16xf32>
    %103 = arith.subf %99, %102 : vector<2x16xf32>
    %104 = math.exp %103 : vector<2x16xf32>
    %cst_63 = arith.constant dense<0.000000e+00> : vector<2xf32>
    %105 = vector.multi_reduction <add>, %104, %cst_63 [1] : vector<2x16xf32> to vector<2xf32>
    %106 = vector.shape_cast %105 : vector<2xf32> to vector<2x1xf32>
    %107 = vector.broadcast %106 : vector<2x1xf32> to vector<2x16xf32>
    %108 = arith.divf %104, %107 : vector<2x16xf32>
    %109 = arith.truncf %108 : vector<2x16xf32> to vector<2x16xbf16>
    %cst_64 = arith.constant dense<0.000000e+00> : vector<2x32xf32>
    %110 = tpu.matmul %109, %0, %cst_64 {dimension_numbers = #tpu.dot_dimension_numbers<[1], [0], [0], [1], [0, 0, 1, 1], [], []>} : vector<2x16xbf16>, vector<16x32xbf16>, vector<2x32xf32> -> vector<2x32xf32>
    %111 = tpu.concatenate %96, %110 in 1 : vector<2x32xf32>, vector<2x32xf32> -> vector<2x64xf32>
    %112 = arith.truncf %111 : vector<2x64xf32> to vector<2x64xbf16>
    %cst_65 = arith.constant dense<0.000000e+00> : vector<2x32xf32>
    %113 = tpu.matmul %112, %19, %cst_65 {dimension_numbers = #tpu.dot_dimension_numbers<[1], [0], [0], [1], [0, 0, 1, 1], [], []>} : vector<2x64xbf16>, vector<64x32xbf16>, vector<2x32xf32> -> vector<2x32xf32>
    %114 = vector.broadcast %20 : vector<1x32xf32> to vector<2x32xf32>
    %115 = arith.addf %113, %114 : vector<2x32xf32>
    %116 = math.tanh %115 : vector<2x32xf32>
    %117 = arith.truncf %116 : vector<2x32xf32> to vector<2x32xbf16>
    %cst_66 = arith.constant dense<0.000000e+00> : vector<2x128xf32>
    %118 = tpu.matmul %117, %21, %cst_66 {dimension_numbers = #tpu.dot_dimension_numbers<[1], [0], [0], [1], [0, 0, 1, 1], [], []>} : vector<2x32xbf16>, vector<32x128xbf16>, vector<2x128xf32> -> vector<2x128xf32>
    %119 = vector.broadcast %22 : vector<1x128xf32> to vector<2x128xf32>
    %120 = arith.addf %118, %119 : vector<2x128xf32>
    %121 = arith.index_cast %c0_i32 : i32 to index
    %c0_67 = arith.constant 0 : index
    %c0_68 = arith.constant 0 : index
    %122 = vector.load %arg12[%121, %c0_67, %c0_68] : memref<1x2x128xf32, #tpu.memory_space<vmem>>, vector<1x2x128xf32>
    %123 = vector.shape_cast %122 : vector<1x2x128xf32> to vector<2x128xf32>
    %124 = vector.shape_cast %120 : vector<2x128xf32> to vector<1x2x128xf32>
    tpu.vector_store %arg12[%121, %c0_67, %c0_68], %124 {strides = array<i32>} : memref<1x2x128xf32, #tpu.memory_space<vmem>>, vector<1x2x128xf32>,
    %c1_i32 = arith.constant 1 : i32
    %c0_69 = arith.constant 0 : index
    %c0_70 = arith.constant 0 : index
    %c0_71 = arith.constant 0 : index
    %125 = vector.load %arg13[%c0_69, %c0_70, %c0_71] : memref<2x2x32xf32, #tpu.memory_space<vmem>>, vector<1x2x32xf32>
    %126 = vector.shape_cast %125 : vector<1x2x32xf32> to vector<2x32xf32>
    %127 = vector.shape_cast %62 : vector<2x32xf32> to vector<1x2x32xf32>
    tpu.vector_store %arg13[%c0_69, %c0_70, %c0_71], %127 {strides = array<i32>} : memref<2x2x32xf32, #tpu.memory_space<vmem>>, vector<1x2x32xf32>,
    %c1_72 = arith.constant 1 : index
    %c0_73 = arith.constant 0 : index
    %c0_74 = arith.constant 0 : index
    %128 = vector.load %arg13[%c1_72, %c0_73, %c0_74] : memref<2x2x32xf32, #tpu.memory_space<vmem>>, vector<1x2x32xf32>
    %129 = vector.shape_cast %128 : vector<1x2x32xf32> to vector<2x32xf32>
    %130 = vector.shape_cast %96 : vector<2x32xf32> to vector<1x2x32xf32>
    tpu.vector_store %arg13[%c1_72, %c0_73, %c0_74], %130 {strides = array<i32>} : memref<2x2x32xf32, #tpu.memory_space<vmem>>, vector<1x2x32xf32>,
    return
  }
  func.func @transform_0(%arg0: i32) -> (i32, i32, i32) {
    %c0_i32 = arith.constant 0 : i32
    %c0_i32_0 = arith.constant 0 : i32
    %c0_i32_1 = arith.constant 0 : i32
    %c0_i32_2 = arith.constant 0 : i32
    return %c0_i32, %c0_i32_0, %c0_i32_1 : i32, i32, i32
  }
  func.func @transform_1(%arg0: i32) -> (i32, i32, i32) {
    %c0_i32 = arith.constant 0 : i32
    %c0_i32_0 = arith.constant 0 : i32
    %c0_i32_1 = arith.constant 0 : i32
    %c0_i32_2 = arith.constant 0 : i32
    return %c0_i32, %c0_i32_0, %c0_i32_1 : i32, i32, i32
  }
  func.func @transform_2(%arg0: i32) -> (i32, i32) {
    %c0_i32 = arith.constant 0 : i32
    %c0_i32_0 = arith.constant 0 : i32
    %c0_i32_1 = arith.constant 0 : i32
    return %c0_i32, %c0_i32_0 : i32, i32
  }
  func.func @transform_3(%arg0: i32) -> (i32, i32) {
    %c0_i32 = arith.constant 0 : i32
    %c0_i32_0 = arith.constant 0 : i32
    %c0_i32_1 = arith.constant 0 : i32
    return %c0_i32, %c0_i32_0 : i32, i32
  }
  func.func @transform_4(%arg0: i32) -> (i32, i32) {
    %c0_i32 = arith.constant 0 : i32
    %c0_i32_0 = arith.constant 0 : i32
    %c0_i32_1 = arith.constant 0 : i32
    return %c0_i32, %c0_i32_0 : i32, i32
  }
  func.func @transform_5(%arg0: i32) -> (i32, i32, i32, i32) {
    %c0_i32 = arith.constant 0 : i32
    %c0_i32_0 = arith.constant 0 : i32
    %c0_i32_1 = arith.constant 0 : i32
    %c0_i32_2 = arith.constant 0 : i32
    %c0_i32_3 = arith.constant 0 : i32
    return %c0_i32, %c0_i32_0, %c0_i32_1, %c0_i32_2 : i32, i32, i32, i32
  }
  func.func @transform_6(%arg0: i32) -> (i32, i32, i32, i32) {
    %c0_i32 = arith.constant 0 : i32
    %c0_i32_0 = arith.constant 0 : i32
    %c0_i32_1 = arith.constant 0 : i32
    %c0_i32_2 = arith.constant 0 : i32
    %c0_i32_3 = arith.constant 0 : i32
    return %c0_i32, %c0_i32_0, %c0_i32_1, %c0_i32_2 : i32, i32, i32, i32
  }
  func.func @transform_7(%arg0: i32) -> (i32, i32) {
    %c0_i32 = arith.constant 0 : i32
    %c0_i32_0 = arith.constant 0 : i32
    %c0_i32_1 = arith.constant 0 : i32
    return %c0_i32, %c0_i32_0 : i32, i32
  }
  func.func @transform_8(%arg0: i32) -> (i32, i32) {
    %c0_i32 = arith.constant 0 : i32
    %c0_i32_0 = arith.constant 0 : i32
    %c0_i32_1 = arith.constant 0 : i32
    return %c0_i32, %c0_i32_0 : i32, i32
  }
  func.func @transform_9(%arg0: i32) -> (i32, i32) {
    %c0_i32 = arith.constant 0 : i32
    %c0_i32_0 = arith.constant 0 : i32
    %c0_i32_1 = arith.constant 0 : i32
    return %c0_i32, %c0_i32_0 : i32, i32
  }
  func.func @transform_10(%arg0: i32) -> (i32, i32) {
    %c0_i32 = arith.constant 0 : i32
    %c0_i32_0 = arith.constant 0 : i32
    %c0_i32_1 = arith.constant 0 : i32
    return %c0_i32, %c0_i32_0 : i32, i32
  }
  func.func @transform_11(%arg0: i32) -> (i32, i32, i32) {
    %c0_i32 = arith.constant 0 : i32
    %c0_i32_0 = arith.constant 0 : i32
    %c0_i32_1 = arith.constant 0 : i32
    %c0_i32_2 = arith.constant 0 : i32
    return %c0_i32, %c0_i32_0, %c0_i32_1 : i32, i32, i32
  }
  func.func @transform_12(%arg0: i32) -> (i32, i32, i32) {
    %c0_i32 = arith.constant 0 : i32
    %c0_i32_0 = arith.constant 0 : i32
    %c0_i32_1 = arith.constant 0 : i32
    %c0_i32_2 = arith.constant 0 : i32
    return %c0_i32, %c0_i32_0, %c0_i32_1 : i32, i32, i32
  }
}

</mosaic_0001>

<bundles_post_ra>
// kernel: tpu_custom_call.1
= control target key start
LH: loop header
LB: loop body
LE: loop exit
PB: predicated region body
PF: predicated region fallthrough
CT: control target
= control target key end

     0   :  { %18 = vsyncpa [#allocation3], 0  ;;  %s1337_s0 = inlined_call_operand.hbm [shape: bf16[1,2,32], index: 0, kind: input, shape index: {}]   ;;  %s1338_s1 = inlined_call_operand.hbm [shape: f32[2,2,32], index: 1, kind: input, shape index: {}]   ;;  %s1339_s2 = inlined_call_operand.hbm [shape: bf16[16,32], index: 2, kind: input, shape index: {}]   ;;  %s1340_s3 = inlined_call_operand.vmem [shape: bf16[32,16], index: 3, kind: input, shape index: {}]   ;;  %s1341_s4 = inlined_call_operand.vmem [shape: f32[2,16], index: 4, kind: input, shape index: {}]   ;;  %s1342_s5 = inlined_call_operand.vmem [shape: bf16[2,2,32,96], index: 5, kind: input, shape index: {}]   ;;  %s1343_s6 = inlined_call_operand.hbm [shape: f32[2,2,1,96], index: 6, kind: input, shape index: {}]   ;;  %s1344_s7 = inlined_call_operand.vmem [shape: bf16[64,32], index: 7, kind: input, shape index: {}]   ;;  %s1345_s8 = inlined_call_operand.vmem [shape: f32[1,32], index: 8, kind: input, shape index: {}]   ;;  %s1346_s9 = inlined_call_operand.hbm [shape: bf16[32,128], index: 9, kind: input, shape index: {}]   ;;  %s1347_s10 = inlined_call_operand.vmem [shape: f32[1,128], index: 10, kind: input, shape index: {}]   ;;  %s1348_s11 = inlined_call_operand.hbm [shape: f32[1,2,128], index: 11, kind: output, shape index: {0}]   ;;  %s1349_s12 = inlined_call_operand.hbm [shape: f32[2,2,32], index: 12, kind: output, shape index: {1}]  }
   0x1   :  { %19 = vsyncpa [#allocation6], 0 }
   0x2   :  { %20 = vsyncpa [#allocation9], 0 }
   0x3   :  { %21 = vsyncpa [#allocation4], 0 }
   0x4   :  { %22 = vsyncpa [#allocation13], 0  ;;  %s1119_s21 = smov [#allocation5]  }
   0x5   :  { %s38_s22 = sshll.u32 %s1119_s21, 4  ;;  %s39_s22 = int_to_ptr.vmem [resolvable:$true] %s38_s22 }
   0x6   :  { %s977_s23 = scalar_lea.vmem %s39_s22, 64  ;;  %p982_p1 = scmp.lt.s32.totalorder %s39_s22, %s39_s22 }
   0x7   :  { %p978_p0 = scmp.ne.s32.totalorder %s39_s22, %s977_s23  ;;  %p983_p2 = scmp.lt.s32.totalorder %s977_s23, %s977_s23 }
   0x9   :  { %p984_p3 = por %p983_p2, %p982_p1 }
   0xb   :  { %p985_p4 = pnand %p984_p3, %p978_p0 }
   0xd   :  { %988 = shalt.err (!%p985_p4)
}
   0xe   :  { %s1120_s24 = smov 32   ;;  %s1121_s25 = smov 2  }
   0xf   :  { %44 = dma.hbm_to_vmem [thread:$0]  %s1338_s1, 64, %s39_s22, [#allocation6], %s1120_s24, %s1120_s24, %s1121_s25  }
  0x10   :  { %s1122_s28 = smov [#allocation8]  }
  0x11   :  { %s68_s29 = sshll.u32 %s1122_s28, 4  ;;  %s69_s29 = int_to_ptr.vmem [resolvable:$true] %s68_s29 }
  0x12   :  { %s997_s30 = scalar_lea.vmem %s69_s29, 64  ;;  %p1002_p6 = scmp.lt.s32.totalorder %s69_s29, %s69_s29 }
  0x13   :  { %p998_p5 = scmp.ne.s32.totalorder %s69_s29, %s997_s30  ;;  %p1003_p7 = scmp.lt.s32.totalorder %s997_s30, %s997_s30 }
  0x15   :  { %p1004_p8 = por %p1003_p7, %p1002_p6 }
  0x17   :  { %p1005_p9 = pnand %p1004_p8, %p998_p5 }
  0x19   :  { %1008 = shalt.err (!%p1005_p9)
}
  0x1a   :  { %s1123_s13 = smov 16   ;;  %s1124_s14 = smov 1  }
  0x1b   :  { %74 = dma.hbm_to_vmem [thread:$0]  %s1343_s6, 64, %s69_s29, [#allocation9], %s1123_s13, %s1123_s13, %s1124_s14  }
  0x1c   :  { %s1125_s17 = smov [#allocation2]   ;;  %s1126_s19 = smov [#allocation7]  }
  0x1d   :  { %s29_s18 = sshll.u32 %s1125_s17, 4  ;;  %s50_s1 = sshll.u32 %s1126_s19, 4  ;;  %s30_s18 = int_to_ptr.vmem [resolvable:$true] %s29_s18  ;;  %s51_s1 = int_to_ptr.vmem [resolvable:$true] %s50_s1 }
  0x1e   :  { %s1017_s20 = scalar_lea.vmem %s30_s18, 16  ;;  %s1021_s21 = scalar_lea.vmem %s30_s18, 32 }
  0x1f   :  { %p1018_p10 = scmp.ne.s32.totalorder %s30_s18, %s1017_s20  ;;  %p1022_p11 = scmp.lt.s32.totalorder %s30_s18, %s30_s18 }
  0x20   :  { %p1023_p12 = scmp.lt.s32.totalorder %s1021_s21, %s1017_s20 }
  0x22   :  { %p1024_p13 = por %p1023_p12, %p1022_p11 }
  0x24   :  { %p1025_p0 = pnand %p1024_p13, %p1018_p10 }
  0x26   :  { %1028 = shalt.err (!%p1025_p0)
}
  0x27   :  { %32 = dma.hbm_to_vmem [thread:$0]  %s1337_s0, 16, %s30_s18, [#allocation3]  }
  0x28   :  { %s1037_s26 = scalar_lea.vmem %s51_s1, 128  ;;  %p1042_p2 = scmp.lt.s32.totalorder %s51_s1, %s51_s1 }
  0x29   :  { %p1038_p1 = scmp.ne.s32.totalorder %s51_s1, %s1037_s26  ;;  %p1043_p3 = scmp.lt.s32.totalorder %s1037_s26, %s1037_s26 }
  0x2b   :  { %p1044_p4 = por %p1043_p3, %p1042_p2 }
  0x2d   :  { %p1045_p5 = pnand %p1044_p4, %p1038_p1 }
  0x2f   :  { %1048 = shalt.err (!%p1045_p5)
}
  0x30   :  { %s1127_s6 = smov 64   ;;  %s1128_s27 = smov 4  }
  0x31   :  { %56 = dma.hbm_to_vmem [thread:$0]  %s1339_s2, 128, %s51_s1, [#allocation6], %s1127_s6, %s1127_s6, %s1128_s27  }
  0x32   :  { %s1129_s30 = smov [#allocation10]  }
  0x33   :  { %s84_s13 = sshll.u32 %s1129_s30, 4  ;;  %s85_s13 = int_to_ptr.vmem [resolvable:$true] %s84_s13 }
  0x34   :  { %s1057_s14 = scalar_lea.vmem %s85_s13, 256  ;;  %p1062_p7 = scmp.lt.s32.totalorder %s85_s13, %s85_s13 }
  0x35   :  { %p1058_p6 = scmp.ne.s32.totalorder %s85_s13, %s1057_s14  ;;  %p1063_p8 = scmp.lt.s32.totalorder %s1057_s14, %s1057_s14 }
  0x37   :  { %p1064_p9 = por %p1063_p8, %p1062_p7 }
  0x39   :  { %p1065_p10 = pnand %p1064_p9, %p1058_p6 }
  0x3b   :  { %1068 = shalt.err (!%p1065_p10)
}
  0x3c   :  { %90 = dma.hbm_to_vmem [thread:$0]  %s1346_s9, 256, %s85_s13, [#allocation9], %s1127_s6, %s1127_s6, %s1128_s27  }
  0x3d   :  { %1109 = dma.done.wait [#allocation3], 16  }
  0x3e   :  { %1110 = vsyncadd [#allocation3], 4294967280 }
  0x3f   :  { %1111 = dma.done.wait [#allocation6], 192  }
  0x40   :  { %1112 = vsyncadd [#allocation6], 4294967104 }
  0x41   :  { %1113 = dma.done.wait [#allocation9], 320  }
  0x42   :  { %1114 = vsyncadd [#allocation9], 4294966976  ;;  %v1130_v0 = vmov 0.0   ;;  %vm1131_vm0 = vmmov 0   ;;  %v934_v1 = vld [vmem:[%s1342_s5 + $0x8] sm:$0xff]   ;;  %v935_v2 = vld [vmem:[%s1342_s5 + $0x18] sm:$0xff]  }
  0x43   :  { %852 = vmatprep.subr.bf16.mxu0 %v1130_v0  ;;  %860 = vmatprep.subr.bf16.mxu1 %v1130_v0  ;;  %v936_v3 = vld [vmem:[%s1342_s5] sm:$0xff]   ;;  %v937_v4 = vld [vmem:[%s1342_s5 + $0x10] sm:$0xff]   ;;  %vm178_vm1 = vcmask 261120   ;;  %v798_v8 = vld [vmem:[#allocation8 + $0x1] ss:$0 sm:$0xff]  ;;  %s1132_s29 = smov 96  }
  0x44   :  { %856 = vmatprep.mubr.msk.bf16.mxu0 %vm1131_vm0, %v1130_v0  ;;  %864 = vmatprep.mubr.msk.bf16.mxu1 %vm1131_vm0, %v1130_v0  ;;  %v159_v5 = vld [vmem:[#allocation2] sm:$0x1]  ;;  %v156_v6 = vld [vmem:[#allocation5] sm:$0x3]  ;;  %v794_v18 = vld [vmem:[#allocation8] ss:$0 sm:$0xff] }
  0x45   :  { %853 = vmatpush3.bf16.msra.mxu0 %v934_v1  ;;  %861 = vmatpush3.bf16.msra.mxu1 %v935_v2  ;;  %v222_v7 = vpack.c.bf16 %v156_v6, %v156_v6  ;;  %v938_v29 = vld [vmem:[%s1342_s5 + $0x38] sm:$0xff]   ;;  %v940_v30 = vld [vmem:[%s1342_s5 + $0x28] sm:$0xff]   ;;  %v939_v32 = vld [vmem:[%s1342_s5 + $0x30] sm:$0xff]   ;;  %vm530_vm2 = vcmask 123904   ;;  %vm745_vm3 = vcmask 254976   ;;  %vm549_vm4 = vcmask 130048  }
  0x46   :  { %854 = vmatprep.subr.bf16.mxu0 %v1130_v0  ;;  %862 = vmatprep.subr.bf16.mxu1 %v1130_v0  ;;  %v158_v33 = vld [vmem:[#allocation5 + $0x2] sm:$0x3]  ;;  %v807_v43 = vld [vmem:[#allocation8 + $0x3] ss:$0 sm:$0xff]  ;;  %v803_v50 = vld [vmem:[#allocation8 + $0x2] ss:$0 sm:$0xff] }
  0x47   :  { %v941_v34 = vld [vmem:[%s1342_s5 + $0x20] sm:$0xff]   ;;  %v379_v35 = vpack.c.bf16 %v158_v33, %v158_v33  ;;  %v942_v2 = vld [vmem:[%s1340_s3 + $0x8] sm:$0xff]   ;;  %vm633_vm5 = vcmask 523264   ;;  %s1133_s21 = smov [#allocation12]  }
  0x48   :  { %s764_s22 = sshll.u32 %s1133_s21, 4  ;;  %s765_s22 = int_to_ptr.vmem [resolvable:$true] %s764_s22 }
  0x49   :  { %855 = vmatpush3.bf16.msra.mxu0 %v936_v3  ;;  %863 = vmatpush3.bf16.msra.mxu1 %v937_v4  ;;  %v943_v3 = vld [vmem:[%s1340_s3] sm:$0xff]   ;;  %s1069_s23 = scalar_lea.vmem %s765_s22, 64  ;;  %p1074_p12 = scmp.lt.s32.totalorder %s765_s22, %s765_s22 }
  0x4a   :  { %868 = vmatprep.subr.bf16.mxu0 %v1130_v0  ;;  %876 = vmatprep.subr.bf16.mxu1 %v1130_v0  ;;  %p1070_p11 = scmp.ne.s32.totalorder %s765_s22, %s1069_s23  ;;  %p1075_p13 = scmp.lt.s32.totalorder %s1069_s23, %s1069_s23 }
  0x4c   :  { %857 = vmatmul.mubr.msk.bf16.vlgmr.msra.gmra.mxu0 %vm178_vm1, %v159_v5  ;;  %865 = vmatmul.mubr.msk.bf16.vlgmr.msra.gmra.mxu1 %vm178_vm1, %v222_v7  ;;  %p1076_p0 = por %p1075_p13, %p1074_p12 }
  0x4d   :  { %872 = vmatprep.mubr.msk.bf16.mxu0 %vm1131_vm0, %v1130_v0  ;;  %880 = vmatprep.mubr.msk.bf16.mxu1 %vm1131_vm0, %v1130_v0 }
  0x4e   :  { %877 = vmatpush3.bf16.msra.mxu1 %v938_v29  ;;  %869 = vmatpush3.bf16.msra.mxu0 %v940_v30  ;;  %p1077_p1 = pnand %p1076_p0, %p1070_p11 }
  0x4f   :  { %878 = vmatprep.subr.bf16.mxu1 %v1130_v0  ;;  %870 = vmatprep.subr.bf16.mxu0 %v1130_v0 }
  0x52   :  { %879 = vmatpush3.bf16.msra.mxu1 %v939_v32  ;;  %871 = vmatpush3.bf16.msra.mxu0 %v941_v34  ;;  %v945_v32 = vld [vmem:[%s1344_s7 + $0x18] sm:$0xff]   ;;  %v947_v34 = vld [vmem:[%s1344_s7 + $0x8] sm:$0xff]  }
  0x53   :  { %892 = vmatprep.subr.bf16.mxu1 %v1130_v0  ;;  %884 = vmatprep.subr.bf16.mxu0 %v1130_v0 }
  0x55   :  { %881 = vmatmul.mubr.msk.bf16.vlgmr.msra.gmra.mxu1 %vm178_vm1, %v379_v35  ;;  %v948_v35 = vld [vmem:[%s1344_s7] sm:$0xff]  }
  0x56   :  { %894 = vmatprep.mubr.msk.bf16.mxu1 %vm1131_vm0, %v1130_v0 }
 0x10c   :  { %v216_v9 = vpop.f32.mrf.mxu0  ;;  %v278_v10 = vpop.f32.mrf.mxu1 }
 0x10d   :  { %v279_v11 = vadd.f32 %v798_v8, %v278_v10  ;;  %v217_v19 = vadd.f32 %v794_v18, %v216_v9 }
 0x10e   :  { %v858_v12 = vpop.f32.mrf.mxu0  ;;  %v866_v13 = vpop.f32.mrf.mxu1 }
 0x10f   :  { %292 = vrot.lane.b32.xlu0 %v279_v11, %s1127_s6  ;;  %v284_v20 = vadd.f32 %v279_v11, %v217_v19  ;;  %v115_v13 = vld [vmem:[%s1341_s4] sm:$0x3] }
 0x110   :  { %v219_v14 = vpop.f32.mrf.mxu0  ;;  %v281_v15 = vpop.f32.mrf.mxu1 }
 0x111   :  { %v802_v21 = vmul.f32 -1.442695, %v284_v20 }
 0x112   :  { %v859_v16 = vpop.f32.mrf.mxu0  ;;  %v867_v17 = vpop.f32.mrf.mxu1 }
 0x113   :  { %951 = vpow2.f32 %v802_v21 }
 0x115   :  { %v435_v44 = vpop.f32.mrf.mxu1 }
 0x116   :  { %v436_v45 = vadd.f32 %v807_v43, %v435_v44  ;;  %v949_v43 = vld [vmem:[#allocation10 + $0x8] sm:$0xff]   ;;  %v950_v44 = vld [vmem:[#allocation10] sm:$0xff]  }
 0x117   :  { %v882_v46 = vpop.f32.mrf.mxu1 }
 0x119   :  { %v438_v47 = vpop.f32.mrf.mxu1 }
 0x11b   :  { %v883_v48 = vpop.f32.mrf.mxu1 }
 0x120   :  { %v952_v22 = vpop.eup %951 }
 0x121   :  { %v288_v23 = vadd.f32 1.0, %v952_v22 }
 0x123   :  { %953 = vrcp.f32 %v288_v23 }
 0x130   :  { %v954_v24 = vpop.eup %953 }
 0x131   :  { %v302_v37 = vsub.f32 1.0, %v954_v24 }
 0x181   :  { %v293_v25 = vpop.permute.xlu0 %292 }
 0x182   :  { %v295_v26 = vmul.f32 %v954_v24, %v293_v25 }
 0x184   :  { %297 = vrot.lane.b32.xlu0 %v295_v26, %s1127_s6 }
 0x1f6   :  { %v298_v27 = vpop.permute.xlu0 %297 }
 0x1f7   :  { %v300_v28 = vadd.f32 %v298_v27, %v217_v19  ;;  %v944_v27 = vld [vmem:[#allocation7] sm:$0xff]  }
 0x1f8   :  { %893 = vmatpush3.bf16.msra.mxu1 %v944_v27 }
 0x1f9   :  { %955 = vtanh.f32 %v300_v28  ;;  %910 = vmatprep.subr.bf16.mxu1 %v1130_v0 }
 0x206   :  { %v956_v31 = vpop.eup %955 }
 0x207   :  { %304 = vrot.lane.b32.xlu1 %v956_v31, %s1132_s29 }
 0x20b   :  { %309 = vrot.lane.b32.xlu1 %v156_v6, %s1120_s24 }
 0x20f   :  { %449 = vrot.lane.b32.xlu1 %v436_v45, %s1127_s6 }
 0x279   :  { %v305_v36 = vpop.permute.xlu1 %304 }
 0x27a   :  { %v307_v39 = vmul.f32 %v305_v36, %v302_v37 }
 0x27d   :  { %v310_v38 = vpop.permute.xlu1 %309 }
 0x27e   :  { %v312_v40 = vmul.f32 %v954_v24, %v310_v38 }
 0x280   :  { %v313_v41 = vadd.f32 %v312_v40, %v307_v39 }
 0x281   :  { %v450_v60 = vpop.permute.xlu1 %449 }
 0x282   :  { %v314_v42 = vpack.c.bf16 %v313_v41, %v313_v41 }
 0x284   :  { %322 = vrot.lane.b32.xlu0 %v314_v42, %s1132_s29 }
 0x2f6   :  { %v323_v49 = vpop.permute.xlu0 %322 }
 0x2f7   :  { %873 = vmatmul.mubr.msk.bf16.vlgmr.msra.gmra.mxu0 %vm178_vm1, %v323_v49 }
 0x2f8   :  { %888 = vmatprep.mubr.msk.bf16.mxu0 %vm1131_vm0, %v1130_v0  ;;  %885 = vmatpush3.bf16.msra.mxu0 %v942_v2 }
 0x2f9   :  { %886 = vmatprep.subr.bf16.mxu0 %v1130_v0 }
 0x2fc   :  { %887 = vmatpush3.bf16.msra.mxu0 %v943_v3 }
 0x2fd   :  { %898 = vmatprep.subr.bf16.mxu0 %v1130_v0 }
 0x3b7   :  { %v373_v51 = vpop.f32.mrf.mxu0 }
 0x3b8   :  { %v374_v52 = vadd.f32 %v803_v50, %v373_v51 }
 0x3b9   :  { %v874_v53 = vpop.f32.mrf.mxu0 }
 0x3ba   :  { %v441_v54 = vadd.f32 %v436_v45, %v374_v52  ;;  %v817_v45 = vld [vmem:[%s1345_s8] ss:$0 sm:$0xff] }
 0x3bb   :  { %v376_v55 = vpop.f32.mrf.mxu0 }
 0x3bc   :  { %v811_v56 = vmul.f32 -1.442695, %v441_v54 }
 0x3bd   :  { %v875_v57 = vpop.f32.mrf.mxu0 }
 0x3be   :  { %957 = vpow2.f32 %v811_v56 }
 0x3cb   :  { %v958_v58 = vpop.eup %957 }
 0x3cc   :  { %v445_v59 = vadd.f32 1.0, %v958_v58 }
 0x3ce   :  { %959 = vrcp.f32 %v445_v59 }
 0x3db   :  { %v960_v61 = vpop.eup %959 }
 0x3dc   :  { %v452_v62 = vmul.f32 %v960_v61, %v450_v60  ;;  %v459_v6 = vsub.f32 1.0, %v960_v61 }
 0x3de   :  { %454 = vrot.lane.b32.xlu0 %v452_v62, %s1127_s6 }
 0x3e2   :  { %466 = vrot.lane.b32.xlu0 %v158_v33, %s1120_s24  ;;  %v946_v33 = vld [vmem:[%s1344_s7 + $0x10] sm:$0xff]  }
 0x450   :  { %v455_v63 = vpop.permute.xlu0 %454 }
 0x451   :  { %v457_v1 = vadd.f32 %v455_v63, %v374_v52 }
 0x453   :  { %961 = vtanh.f32 %v457_v1 }
 0x454   :  { %v467_v5 = vpop.permute.xlu0 %466 }
 0x455   :  { %v469_v8 = vmul.f32 %v960_v61, %v467_v5 }
 0x460   :  { %v962_v4 = vpop.eup %961 }
 0x461   :  { %461 = vrot.lane.b32.xlu1 %v962_v4, %s1132_s29 }
 0x4d3   :  { %v462_v7 = vpop.permute.xlu1 %461 }
 0x4d4   :  { %v464_v9 = vmul.f32 %v462_v7, %v459_v6 }
 0x4d6   :  { %v470_v10 = vadd.f32 %v469_v8, %v464_v9 }
 0x4d8   :  { %v471_v11 = vpack.c.bf16 %v470_v10, %v470_v10 }
 0x4da   :  { %473 = vrot.lane.b32.xlu1 %v471_v11, %s1132_s29 }
 0x54c   :  { %v474_v12 = vpop.permute.xlu1 %473 }
 0x54d   :  { %889 = vmatmul.mubr.msk.bf16.vlgmr.msra.gmra.mxu0 %vm178_vm1, %v474_v12 }
 0x54e   :  { %906 = vmatprep.mubr.msk.bf16.mxu0 %vm1131_vm0, %v1130_v0  ;;  %899 = vmatpush3.bf16.msra.mxu0 %v945_v32 }
 0x54f   :  { %900 = vmatprep.subr.bf16.mxu0 %v1130_v0 }
 0x552   :  { %901 = vmatpush3.bf16.msra.mxu0 %v946_v33 }
 0x553   :  { %902 = vmatprep.subr.bf16.mxu0 %v1130_v0 }
 0x556   :  { %903 = vmatpush3.bf16.msra.mxu0 %v947_v34 }
 0x557   :  { %904 = vmatprep.subr.bf16.mxu0 %v1130_v0 }
 0x55a   :  { %905 = vmatpush3.bf16.msra.mxu0 %v948_v35 }
 0x60d   :  { %v524_v14 = vpop.f32.mrf.mxu0 }
 0x60e   :  { %v525_v15 = vadd.f32 %v524_v14, %v115_v13 }
 0x60f   :  { %v890_v16 = vpop.f32.mrf.mxu0 }
 0x610   :  { %v531_v17 = vsel %vm530_vm2, %v525_v15, -inf }
 0x611   :  { %532 = vmax.xlane.f32.xlu0 %v531_v17  ;;  %v527_v18 = vpop.f32.mrf.mxu0 }
 0x613   :  { %v891_v19 = vpop.f32.mrf.mxu0 }
 0x627   :  { %594 = vrot.lane.b32.xlu0 %v470_v10, %s1132_s29 }
 0x62b   :  { %742 = vrot.lane.b32.xlu0 %v313_v41, %s1132_s29 }
 0x69a   :  { %v533_v20 = vpop.xlane.xlu0 %532 }
 0x69b   :  { %v534_v21 = vsub.f32 %v525_v15, %v533_v20 }
 0x69d   :  { %v535_v22 = vmul.f32 1.442695, %v534_v21 }
 0x69e   :  { %v595_v23 = vpop.permute.xlu0 %594 }
 0x69f   :  { %963 = vpow2.f32 %v535_v22  ;;  %748 = vst.msk [vmem:[#allocation12 + $0x2] sm:$0x3] %vm745_vm3, %v595_v23 }
 0x6a2   :  { %v743_v24 = vpop.permute.xlu0 %742 }
 0x6a3   :  { %746 = vst.msk [vmem:[#allocation12] sm:$0x3] %vm745_vm3, %v743_v24 }
 0x6ac   :  { %v964_v25 = vpop.eup %963 }
 0x6ad   :  { %v537_v26 = vsel %vm530_vm2, %v964_v25, 0.0 }
 0x6ae   :  { %538 = vadd.xlane.f32.xlu1 %v537_v26 }
 0x737   :  { %v539_v28 = vpop.xlane.xlu1 %538 }
 0x738   :  { %965 = vrcp.f32 %v539_v28 }
 0x745   :  { %v966_v29 = vpop.eup %965 }
 0x746   :  { %v541_v30 = vmul.f32 %v966_v29, %v964_v25 }
 0x748   :  { %v542_v31 = vpack.c.bf16 %v541_v30, %v541_v30 }
 0x74a   :  { %895 = vmatmul.mubr.msk.bf16.vlgmr.msra.gmra.mxu1 %vm549_vm4, %v542_v31 }
 0x74b   :  { %914 = vmatprep.mubr.msk.bf16.mxu1 %vm1131_vm0, %v1130_v0  ;;  %911 = vmatpush3.bf16.msra.mxu1 %v949_v43 }
 0x74c   :  { %912 = vmatprep.subr.bf16.mxu1 %v1130_v0 }
 0x74f   :  { %913 = vmatpush3.bf16.msra.mxu1 %v950_v44 }
 0x80a   :  { %v587_v36 = vpop.f32.mrf.mxu1 }
 0x80b   :  { %598 = vrot.lane.b32.xlu1 %v587_v36, %s1120_s24 }
 0x80c   :  { %v896_v37 = vpop.f32.mrf.mxu1 }
 0x80e   :  { %v590_v38 = vpop.f32.mrf.mxu1 }
 0x810   :  { %v897_v39 = vpop.f32.mrf.mxu1 }
 0x87d   :  { %v599_v40 = vpop.permute.xlu1 %598 }
 0x87e   :  { %v601_v41 = vsel %vm178_vm1, %v595_v23, %v599_v40 }
 0x87f   :  { %v602_v42 = vpack.c.bf16 %v601_v41, %v601_v41 }
 0x881   :  { %907 = vmatmul.mubr.msk.bf16.vlgmr.msra.gmra.mxu0 %vm633_vm5, %v602_v42 }
 0x941   :  { %v671_v46 = vpop.f32.mrf.mxu0 }
 0x942   :  { %v672_v47 = vadd.f32 %v817_v45, %v671_v46 }
 0x943   :  { %v908_v48 = vpop.f32.mrf.mxu0 }
 0x944   :  { %967 = vtanh.f32 %v672_v47 }
 0x945   :  { %v674_v49 = vpop.f32.mrf.mxu0 }
 0x947   :  { %v909_v50 = vpop.f32.mrf.mxu0 }
 0x951   :  { %v968_v51 = vpop.eup %967 }
 0x952   :  { %v678_v52 = vpack.c.bf16 %v968_v51, %v968_v51 }
 0x954   :  { %915 = vmatmul.mubr.msk.bf16.vlgmr.msra.gmra.mxu1 %vm178_vm1, %v678_v52 }
 0x955   :  { %1080 = shalt.err (!%p1077_p1)
}
 0x956   :  { %770 = dma.vmem_to_hbm [thread:$0]  %s765_s22, 64, %s1349_s12, [#allocation13], %s1120_s24, %s1120_s24, %s1121_s25  }
 0x957   :  { %v823_v0 = vld [vmem:[%s1347_s10] ss:$0 sm:$0xff]  ;;  %s1134_s29 = smov [#allocation11]  }
 0x958   :  { %s755_s30 = sshll.u32 %s1134_s29, 4  ;;  %s756_s30 = int_to_ptr.vmem [resolvable:$true] %s755_s30 }
 0x959   :  { %s1089_s13 = scalar_lea.vmem %s756_s30, 32  ;;  %p1094_p3 = scmp.lt.s32.totalorder %s756_s30, %s756_s30 }
 0x95a   :  { %p1090_p2 = scmp.ne.s32.totalorder %s756_s30, %s1089_s13  ;;  %p1095_p4 = scmp.lt.s32.totalorder %s1089_s13, %s1089_s13 }
 0x95c   :  { %p1096_p5 = por %p1095_p4, %p1094_p3 }
 0x95e   :  { %p1097_p6 = pnand %p1096_p5, %p1090_p2 }
 0xa14   :  { %v734_v53 = vpop.f32.mrf.mxu1 }
 0xa15   :  { %v735_v54 = vadd.f32 %v823_v0, %v734_v53 }
 0xa16   :  { %v916_v55 = vpop.f32.mrf.mxu1 }
 0xa17   :  { %740 = vst [vmem:[#allocation11] sm:$0x3] %v735_v54 }
 0xa18   :  { %v737_v56 = vpop.f32.mrf.mxu1 }
 0xa19   :  { %1100 = shalt.err (!%p1097_p6)
}
 0xa1a   :  { %758 = dma.vmem_to_hbm [thread:$0]  %s756_s30, 32, %s1348_s11, [#allocation4]   ;;  %v917_v57 = vpop.f32.mrf.mxu1 }
 0xa1b   :  { %1115 = dma.done.wait [#allocation4], 32  }
 0xa1c   :  { %1116 = vsyncadd [#allocation4], 4294967264 }
 0xa1d   :  { %1117 = dma.done.wait [#allocation13], 64  }
 0xa1e   :  { %1118 = vsyncadd [#allocation13], 4294967232 }
 0xa1f   :  { %777 = vsyncpa [#allocation3], 1 }
 0xa20   :  { %778 = vsyncpa [#allocation6], 1 }
 0xa21   :  { %779 = vsyncpa [#allocation9], 1 }
 0xa22   :  { %780 = vsyncpa [#allocation4], 1 }
 0xa23   :  { %781 = vsyncpa [#allocation13], 1 }

</bundles_post_ra>
